<compile_context>
chip_gen: v7x
topology: tpu7x:2x2x1
jax: 0.10.0
libtpu: 0.0.40
codegen_flags: <defaults>
</compile_context>

<pallas_src>
import functools

import jax
import jax.numpy as jnp
from jax.experimental import pallas as pl
from jax.experimental.pallas import tpu as pltpu


LANE = 128    # TPU lane width
MAX_TB = 512  # batch-tile cap (mem/overhead-bound regime; ~85% HBM roofline)


def _round_up(n, m):
    return ((n + m - 1) // m) * m


def vanilla_net_kernel(x_ref, w_body_ref, b_body_ref, w_head_ref, b_head_ref,
                       y_ref):
    cd = w_body_ref.dtype                       # MXU input dtype (f32 or bf16)

    # body: phi = relu(x @ W_body + b_body)   (f32 MXU accumulation)
    x = x_ref[...].astype(cd)
    phi = jnp.dot(x, w_body_ref[...], preferred_element_type=jnp.float32)
    phi = jnp.maximum(phi + b_body_ref[...], 0.0)   # f32 epilogue (v5e-safe)

    # head: matmul against the lane-padded head weight, then store only the
    # columns the output block actually has (out_pad when lane-dense,
    # output_dim when the head is narrow -> single narrow store, no padded
    # writeback + wrapper slice).
    y = jnp.dot(phi.astype(cd), w_head_ref[...],
                preferred_element_type=jnp.float32)
    y = y + b_head_ref[...]
    y_ref[...] = y[:, : y_ref.shape[-1]].astype(y_ref.dtype)


def prepare_params(params, output_dim, *, mxu_dtype=jnp.float32):
    """One-time prep: transpose to [in, out]; pad head weight/bias to 128 lanes.

    mxu_dtype=jnp.bfloat16 is recommended at production sizes on v6e/v7x
    (full MXU rate, half the resident-weight DMA/VMEM); biases stay f32.
    """
    f32 = jnp.float32
    w_body = params["w_body"].T.astype(mxu_dtype)            # [state_dim, feature_dim]
    b_body = params["b_body"].reshape(1, -1).astype(f32)     # [1, feature_dim]

    feature_dim = w_body.shape[1]
    out_pad = _round_up(max(output_dim, 1), LANE)

    w_head = jnp.zeros((feature_dim, out_pad), mxu_dtype)
    w_head = w_head.at[:, :output_dim].set(params["w_head"].T.astype(mxu_dtype))
    b_head = jnp.zeros((1, out_pad), f32)
    b_head = b_head.at[:, :output_dim].set(params["b_head"].astype(f32))

    return {"w_body": w_body, "b_body": b_body,
            "w_head": w_head, "b_head": b_head}


def _choose_tb(B):
    """Batch tile: big (<=512), sublane-aligned; >=2 tiles when B allows (v7x)."""
    tb = min(_round_up(B, 8), MAX_TB)
    if B >= 16 and pl.cdiv(B, tb) < 2:
        tb = max(8, _round_up(pl.cdiv(B, 2), 8))
    return tb


def vanilla_net_forward(x, prep, output_dim, *, tb=None):
    B, state_dim = x.shape
    feature_dim = prep["w_body"].shape[1]
    out_pad = prep["w_head"].shape[1]          # STATIC (from array shape), jit-safe
    f32 = jnp.float32

    if tb is None:
        tb = _choose_tb(B)
    grid = (pl.cdiv(B, tb),)

    # Lane-dense full-slab store when output_dim is already a multiple of 128;
    # otherwise emit the unpadded output directly (narrow masked store beats
    # padded writeback + wrapper slice for tiny heads).
    out_cols = out_pad if output_dim % LANE == 0 else output_dim

    resident = lambda shape: pl.BlockSpec(shape, lambda i: (0, 0))

    itemsize = lambda a: a.size * a.dtype.itemsize
    cost = pl.CostEstimate(
        flops=2 * B * feature_dim * (state_dim + out_pad),
        transcendentals=0,
        bytes_accessed=(itemsize(x) + itemsize(prep["w_body"])
                        + itemsize(prep["b_body"]) + itemsize(prep["w_head"])
                        + itemsize(prep["b_head"]) + B * out_cols * 4),
    )

    y = pl.pallas_call(
        vanilla_net_kernel,
        grid=grid,
        in_specs=[
            pl.BlockSpec((tb, state_dim), lambda i: (i, 0)),     # x: tiled over B
            resident((state_dim, feature_dim)),                  # body weight (VMEM-resident)
            resident((1, feature_dim)),                          # body bias (f32)
            resident((feature_dim, out_pad)),                    # head weight (lane-padded)
            resident((1, out_pad)),                              # head bias (f32)
        ],
        out_specs=pl.BlockSpec((tb, out_cols), lambda i: (i, 0)),
        out_shape=jax.ShapeDtypeStruct((B, out_cols), f32),
        compiler_params=pltpu.CompilerParams(
            dimension_semantics=("parallel",)),
        cost_estimate=cost,
    )(x, prep["w_body"], prep["b_body"], prep["w_head"], prep["b_head"])

    # out_cols == output_dim in the narrow-head case and == output_dim when
    # lane-dense (output_dim % 128 == 0), so no wrapper slice is ever needed.
    return y
    # TODO(synk): for feature_dim >= ~2-4K, add a K/feature grid axis
    # ("arbitrary") with an f32 VMEM accumulator instead of fully-resident
    # weights to stay inside v7x's 64 MiB VMEM and avoid spilling phi.


def make_params(key, state_dim, feature_dim, output_dim):
    # Synthetic stand-in for layer_init (orthogonal init + zero bias in the
    # reference); PyTorch layout [out, in].
    ks = jax.random.split(key, 2)
    scale = 0.1
    return {
        "w_body": scale * jax.random.normal(ks[0], (feature_dim, state_dim), jnp.float32),
        "b_body": jnp.zeros((feature_dim,), jnp.float32),
        "w_head": scale * jax.random.normal(ks[1], (output_dim, feature_dim), jnp.float32),
        "b_head": jnp.zeros((output_dim,), jnp.float32),
    }


def reference_forward(x, params):
    phi = jnp.maximum(x @ params["w_body"].T + params["b_body"], 0.0)
    return phi @ params["w_head"].T + params["b_head"]


if __name__ == "__main__":
    B, state_dim, feature_dim, output_dim = 16, 16, 32, 6

    key = jax.random.PRNGKey(0)
    kx, kp = jax.random.split(key)
    x = jax.random.normal(kx, (B, state_dim), jnp.float32)
    params = make_params(kp, state_dim, feature_dim, output_dim)

    # Prepare (transpose + pad) weights ONCE, outside the forward call.
    prep = prepare_params(params, output_dim)

    fwd = jax.jit(functools.partial(vanilla_net_forward, output_dim=output_dim))
    y = fwd(x, prep)
    jax.block_until_ready(y)

    y_ref = reference_forward(x, params)
    assert y.shape == (B, output_dim), y.shape
    assert jnp.allclose(y, y_ref, atol=1e-5), float(jnp.max(jnp.abs(y - y_ref)))

    print("KERNEL_OK")
</pallas_src>

<mosaic_0001>
module attributes {stable_mosaic.version = 11 : i64} {
  func.func @vanilla_net_kernel(%arg0: i32, %arg1: memref<8x16xf32, #tpu.memory_space<vmem>>, %arg2: memref<16x32xf32, #tpu.memory_space<vmem>>, %arg3: memref<1x32xf32, #tpu.memory_space<vmem>>, %arg4: memref<32x128xf32, #tpu.memory_space<vmem>>, %arg5: memref<1x128xf32, #tpu.memory_space<vmem>>, %arg6: memref<8x6xf32, #tpu.memory_space<vmem>>) attributes {dimension_semantics = [#tpu.dimension_semantics<parallel>], iteration_bounds = array<i64: 2>, scalar_prefetch = 0 : i64, scratch_operands = 0 : i64, tpu.core_type = #tpu.core_type<tc>, window_params = [{transform_indices = @transform_0, window_bounds = array<i64: 8, 16>}, {pipeline_mode = #tpu.pipeline_mode<synchronous>, transform_indices = @transform_1, window_bounds = array<i64: 16, 32>}, {pipeline_mode = #tpu.pipeline_mode<synchronous>, transform_indices = @transform_2, window_bounds = array<i64: 1, 32>}, {pipeline_mode = #tpu.pipeline_mode<synchronous>, transform_indices = @transform_3, window_bounds = array<i64: 32, 128>}, {pipeline_mode = #tpu.pipeline_mode<synchronous>, transform_indices = @transform_4, window_bounds = array<i64: 1, 128>}, {transform_indices = @transform_5, window_bounds = array<i64: 8, 6>}]} {
    %c0 = arith.constant 0 : index
    %c0_0 = arith.constant 0 : index
    %0 = vector.load %arg1[%c0, %c0_0] : memref<8x16xf32, #tpu.memory_space<vmem>>, vector<8x16xf32>
    %c0_1 = arith.constant 0 : index
    %c0_2 = arith.constant 0 : index
    %1 = vector.load %arg2[%c0_1, %c0_2] : memref<16x32xf32, #tpu.memory_space<vmem>>, vector<16x32xf32>
    %cst = arith.constant dense<0.000000e+00> : vector<8x32xf32>
    %2 = tpu.matmul %0, %1, %cst {dimension_numbers = #tpu.dot_dimension_numbers<[1], [0], [0], [1], [0, 0, 1, 1], [], []>} : vector<8x16xf32>, vector<16x32xf32>, vector<8x32xf32> -> vector<8x32xf32>
    %c0_3 = arith.constant 0 : index
    %c0_4 = arith.constant 0 : index
    %3 = vector.load %arg3[%c0_3, %c0_4] : memref<1x32xf32, #tpu.memory_space<vmem>>, vector<1x32xf32>
    %4 = vector.broadcast %3 : vector<1x32xf32> to vector<8x32xf32>
    %5 = arith.addf %2, %4 : vector<8x32xf32>
    %cst_5 = arith.constant 0.000000e+00 : f32
    %6 = vector.broadcast %cst_5 : f32 to vector<8x32xf32>
    %7 = arith.maximumf %5, %6 : vector<8x32xf32>
    %c0_6 = arith.constant 0 : index
    %c0_7 = arith.constant 0 : index
    %8 = vector.load %arg4[%c0_6, %c0_7] : memref<32x128xf32, #tpu.memory_space<vmem>>, vector<32x128xf32>
    %cst_8 = arith.constant dense<0.000000e+00> : vector<8x128xf32>
    %9 = tpu.matmul %7, %8, %cst_8 {dimension_numbers = #tpu.dot_dimension_numbers<[1], [0], [0], [1], [0, 0, 1, 1], [], []>} : vector<8x32xf32>, vector<32x128xf32>, vector<8x128xf32> -> vector<8x128xf32>
    %c0_9 = arith.constant 0 : index
    %c0_10 = arith.constant 0 : index
    %10 = vector.load %arg5[%c0_9, %c0_10] : memref<1x128xf32, #tpu.memory_space<vmem>>, vector<1x128xf32>
    %11 = vector.broadcast %10 : vector<1x128xf32> to vector<8x128xf32>
    %12 = arith.addf %9, %11 : vector<8x128xf32>
    %13 = vector.extract_strided_slice %12 {offsets = [0, 0], sizes = [8, 6], strides = [1, 1]} : vector<8x128xf32> to vector<8x6xf32>
    %c0_11 = arith.constant 0 : index
    %c0_12 = arith.constant 0 : index
    %14 = vector.load %arg6[%c0_11, %c0_12] : memref<8x6xf32, #tpu.memory_space<vmem>>, vector<8x6xf32>
    tpu.vector_store %arg6[%c0_11, %c0_12], %13 {strides = array<i32>} : memref<8x6xf32, #tpu.memory_space<vmem>>, vector<8x6xf32>,
    return
  }
  func.func @transform_0(%arg0: i32) -> (i32, i32) {
    %c0_i32 = arith.constant 0 : i32
    %c0_i32_0 = arith.constant 0 : i32
    return %arg0, %c0_i32 : i32, i32
  }
  func.func @transform_1(%arg0: i32) -> (i32, i32) {
    %c0_i32 = arith.constant 0 : i32
    %c0_i32_0 = arith.constant 0 : i32
    %c0_i32_1 = arith.constant 0 : i32
    return %c0_i32, %c0_i32_0 : i32, i32
  }
  func.func @transform_2(%arg0: i32) -> (i32, i32) {
    %c0_i32 = arith.constant 0 : i32
    %c0_i32_0 = arith.constant 0 : i32
    %c0_i32_1 = arith.constant 0 : i32
    return %c0_i32, %c0_i32_0 : i32, i32
  }
  func.func @transform_3(%arg0: i32) -> (i32, i32) {
    %c0_i32 = arith.constant 0 : i32
    %c0_i32_0 = arith.constant 0 : i32
    %c0_i32_1 = arith.constant 0 : i32
    return %c0_i32, %c0_i32_0 : i32, i32
  }
  func.func @transform_4(%arg0: i32) -> (i32, i32) {
    %c0_i32 = arith.constant 0 : i32
    %c0_i32_0 = arith.constant 0 : i32
    %c0_i32_1 = arith.constant 0 : i32
    return %c0_i32, %c0_i32_0 : i32, i32
  }
  func.func @transform_5(%arg0: i32) -> (i32, i32) {
    %c0_i32 = arith.constant 0 : i32
    %c0_i32_0 = arith.constant 0 : i32
    return %arg0, %c0_i32 : i32, i32
  }
}

</mosaic_0001>

<bundles_post_ra>
// kernel: vanilla_net_forward.1
= control target key start
LH: loop header
LB: loop body
LE: loop exit
PB: predicated region body
PF: predicated region fallthrough
CT: control target
= control target key end

     0   :  { %10 = vsyncpa [#allocation3], 0  ;;  %s985_s0 = inlined_call_operand.hbm [shape: f32[16,16], index: 0, kind: input, shape index: {}]   ;;  %s986_s1 = inlined_call_operand.hbm [shape: f32[16,32], index: 1, kind: input, shape index: {}]   ;;  %s987_s2 = inlined_call_operand.vmem [shape: f32[1,32], index: 2, kind: input, shape index: {}]   ;;  %s988_s3 = inlined_call_operand.hbm [shape: f32[32,128], index: 3, kind: input, shape index: {}]   ;;  %s989_s4 = inlined_call_operand.vmem [shape: f32[1,128], index: 4, kind: input, shape index: {}]   ;;  %s990_s5 = inlined_call_operand.vmem [shape: f32[16,6], index: 5, kind: output, shape index: {}]  }
   0x1   :  { %12 = vsyncpa [#allocation3 + $0x1], 0 }
   0x2   :  { %13 = vsyncpa [#allocation5], 0  ;;  %s807_s18 = smov 0   ;;  %s809_s19 = smov 0  }
   0x3   :  { %s811_s20 = smov 0   ;;  %s813_s21 = smov 0  }
   0x4 LB: > { %s826_s22 = sadd.s32 4294967295, %s767_s21   ;;  %p39_p0 = scmp.ne.s32.totalorder %s759_s19, %s755_s18  ;;  %s767_s21 = sphi %s813_s21, %s1005_s21   ;;  %s763_s20 = sphi %s811_s20, %s1004_s20   ;;  %s759_s19 = sphi %s809_s19, %s1003_s19   ;;  %s755_s18 = sphi %s807_s18, %s1002_s18  }
   0x5   : > { %p991_p1 = scmp.eq.s32.totalorder %s826_s22, 0  ;;  %p526_p2 = scmp.ge.s32.totalorder %s767_s21, 1 }
   0x6   : > { %p160_p3 = scmp.lt.s32.totalorder %s767_s21, 3  ;;  %s769_s25 = smov [#allocation4]  }
   0x7   : > { %p834_p4 = por %p991_p1, %p39_p0  ;;  %s172_s26 = sshll.u32 %s769_s25, 4  ;;  %s173_s26 = int_to_ptr.vmem [resolvable:$true] %s172_s26 }
   0x8   : > { %p838_p5 = pnand %p526_p2, %p160_p3  ;;  %s770_s28 = smov [#allocation6]  }
   0x9   : > { %s994_s23 = scalar_select %p834_p4, 1, 0 }
   0xa   : > { %s995_s24 = scalar_select %p838_p5, 1, 0 }
   0xb   : > { %p588_p6 = pneg %p838_p5  ;;  %s188_s29 = sshll.u32 %s770_s28, 4  ;;  %s850_s29 = int_to_ptr.vmem [resolvable:$true] %s188_s29 }
   0xc   : > { %s643_s7 = scalar_lea.hbm %s986_s1, 256 }
   0xd   : > { %p846_p7 = pnand %p588_p6, %p991_p1  ;;  %p644_p8 = scmp.ne.s32.totalorder %s986_s1, %s643_s7 }
   0xe   : > { %p650_p12 = scmp.lt.u32.totalorder %s643_s7, %s986_s1 }
   0xf   : > { %p645_p9 = pneg %p846_p7 }
  0x11   : > { %p646_p10 = pnand %p645_p9, %p644_p8 }
  0x13   : > { %p647_p11 = pneg %p646_p10 }
  0x15   : > { %p652_p13 = pnand %p650_p12, %p647_p11 }
  0x17   : > { %655 = shalt.err (!%p652_p13)
}
  0x18   : > { %s656_s12 = scalar_lea.vmem %s173_s26, 256  ;;  %p664_p6 = scmp.lt.s32.totalorder %s173_s26, %s173_s26 }
  0x19   : > { %p657_p0 = scmp.ne.s32.totalorder %s173_s26, %s656_s12  ;;  %p665_p1 = scmp.lt.s32.totalorder %s656_s12, %s656_s12 }
  0x1b   : > { %p659_p2 = pnand %p657_p0, %p645_p9  ;;  %p666_p4 = por %p665_p1, %p664_p6 }
  0x1d   : > { %p660_p3 = pneg %p659_p2 }
  0x1f   : > { %p667_p5 = pnand %p666_p4, %p660_p3 }
  0x21   : > { %670 = shalt.err (!%p667_p5)
}
  0x22   : > { %s771_s13 = smov 128   ;;  %s772_s14 = smov 8  }
  0x23   : > { %591 = dma.hbm_to_vmem [thread:$0]  (!%p846_p7), %s986_s1, 256, %s173_s26, [#allocation5], %s771_s13, %s771_s13, %s772_s14  }
  0x24   : > { %s671_s25 = scalar_lea.hbm %s988_s3, 512 }
  0x25   : > { %p672_p8 = scmp.ne.s32.totalorder %s988_s3, %s671_s25  ;;  %p678_p5 = scmp.lt.u32.totalorder %s671_s25, %s988_s3 }
  0x27   : > { %p674_p1 = pnand %p672_p8, %p645_p9 }
  0x29   : > { %p675_p4 = pneg %p674_p1 }
  0x2b   : > { %p680_p10 = pnand %p678_p5, %p675_p4 }
  0x2d   : > { %683 = shalt.err (!%p680_p10)
}
  0x2e   : > { %s684_s26 = scalar_lea.vmem %s850_s29, 512  ;;  %p692_p0 = scmp.lt.s32.totalorder %s850_s29, %s850_s29 }
  0x2f   : > { %p685_p11 = scmp.ne.s32.totalorder %s850_s29, %s684_s26  ;;  %p693_p2 = scmp.lt.s32.totalorder %s684_s26, %s684_s26 }
  0x31   : > { %p687_p12 = pnand %p685_p11, %p645_p9  ;;  %p694_p3 = por %p693_p2, %p692_p0 }
  0x33   : > { %p688_p13 = pneg %p687_p12 }
  0x35   : > { %p695_p6 = pnand %p694_p3, %p688_p13 }
  0x37   : > { %698 = shalt.err (!%p695_p6)
}
  0x38   : > { %594 = dma.hbm_to_vmem [thread:$0]  (!%p846_p7), %s988_s3, 512, %s850_s29, [#allocation5], %s771_s13, %s771_s13, %s772_s14  }
  0x39   : > { %s900_s10 = sadd.s32 1, %s767_s21   ;;  %s26_s11 = sadd.s32 1, %s763_s20 }
  0x3a   : > { %s23_s27 = ssub.s32 %s767_s21, %s900_s10  ;;  %p33_p9 = scmp.ne.s32.totalorder %s763_s20, %s759_s19 }
  0x3b   : > { %p24_p8 = scmp.eq.s32.totalorder %s23_s27, 0  ;;  %p34_p1 = scmp.eq.s32.totalorder %s767_s21, 0 }
  0x3c   : > { %p601_p4 = scmp.lt.s32.totalorder %s767_s21, 2  ;;  %s205_s12 = sand.u32 1, %s763_s20  }
  0x3d   : > { %s911_s15 = scalar_select %p24_p8, %s763_s20, %s26_s11  }
  0x3e   : > { %p35_p5 = por %p34_p1, %p33_p9  ;;  %s530_s16 = sshll.u32 %s205_s12, 3 }
  0x3f   : > { %s531_s17 = sshll.u32 %s767_s21, 7  ;;  %s209_s29 = scalar_lea.vmem [#allocation2], %s530_s16 }
  0x40   : > { %s917_s28 = scalar_lea.hbm %s985_s0, %s531_s17  ;;  %s216_s13 = sshll.u32 %s209_s29, 4  ;;  %s923_s13 = int_to_ptr.vmem [resolvable:$true] %s216_s13 }
  0x41   : > { %p919_p7 = pnand %p601_p4, %p35_p5  ;;  %s206_s21 = scalar_lea.sflag [#allocation3], %s205_s12 }
  0x42   : > { %s699_s30 = scalar_lea.hbm %s917_s28, 128  ;;  %s704_s26 = scalar_lea.hbm %s985_s0, 256 }
  0x43   : > { %p700_p10 = scmp.ne.s32.totalorder %s917_s28, %s699_s30  ;;  %p701_p11 = pneg %p919_p7 }
  0x44   : > { %p705_p0 = scmp.lt.u32.totalorder %s917_s28, %s985_s0  ;;  %p706_p2 = scmp.lt.u32.totalorder %s704_s26, %s699_s30 }
  0x45   : > { %p702_p12 = pnand %p701_p11, %p700_p10  ;;  %p708_p6 = scmp.lt.u32.totalorder %s699_s30, %s917_s28 }
  0x46   : > { %p707_p3 = por %p706_p2, %p705_p0 }
  0x47   : > { %p703_p13 = pneg %p702_p12 }
  0x48   : > { %p709_p9 = por %p708_p6, %p707_p3 }
  0x4a   : > { %p710_p8 = pnand %p709_p9, %p703_p13 }
  0x4c   : > { %713 = shalt.err (!%p710_p8)
}
  0x4d   : > { %s714_s11 = scalar_lea.vmem %s923_s13, 128  ;;  %s773_s27 = smov [#allocation2]  }
  0x4e   : > { %p715_p1 = scmp.ne.s32.totalorder %s923_s13, %s714_s11  ;;  %s719_s12 = sshll.u32 %s773_s27, 4  ;;  %s720_s12 = int_to_ptr.vmem [resolvable:$false] %s719_s12 }
  0x4f   : > { %s721_s16 = scalar_lea.vmem %s720_s12, 256  ;;  %p722_p10 = scmp.lt.s32.totalorder %s923_s13, %s720_s12 }
  0x50   : > { %p717_p4 = pnand %p715_p1, %p701_p11  ;;  %p723_p12 = scmp.lt.s32.totalorder %s721_s16, %s714_s11 }
  0x52   : > { %p718_p5 = pneg %p717_p4  ;;  %p724_p0 = por %p723_p12, %p722_p10 }
  0x54   : > { %p725_p2 = pnand %p724_p0, %p718_p5 }
  0x56   : > { %728 = shalt.err (!%p725_p2)
}
  0x57   : > { %598 = dma.hbm_to_vmem [thread:$0]  (!%p919_p7), %s917_s28, 128, %s923_s13, %s206_s21  }
  0x58   : > { %p998_p13 = scmp.ne.s32.totalorder %s995_s24, 0 }
  0x59   : > { %s227_s17 = sand.u32 (!%p998_p13), 1, %s759_s19   ;;  %p999_p11 = scmp.ne.s32.totalorder (!%p998_p13), %s994_s23, 0 }
  0x5a   : > { %225 = sbr.rel (%p998_p13) target bundleno = 538 (0x21a), region = 40  ;;  %s533_s18 = sshll.u32 (!%p998_p13), %s227_s17, 3 }
  0x5b   : > { %s228_s25 = scalar_lea.sflag (!%p998_p13), [#allocation3], %s227_s17  ;;  %s231_s29 = scalar_lea.vmem (!%p998_p13), [#allocation2], %s533_s18 }
  0x61   : > { %746 = dma.done.wait (%p999_p11), %s228_s25, 128  }
  0x62   : > { %748 = vsyncadd (%p999_p11), %s228_s25, 4294967168  ;;  %p1000_p3 = scmp.eq.s32.totalorder %s826_s22, 0 }
  0x64   : > { %750 = dma.done.wait (%p1000_p3), [#allocation5], 768   ;;  %p1001_p6 = pmov %p1000_p3 }
  0x65   : > { %v774_v0 = vmov 0.0|0.0   ;;  %vm775_vm0 = vmmov 0   ;;  %v776_v1 = vmov 0.0   ;;  %v270_v2 = vld [vmem:[#allocation4] sm:$0xff]  ;;  %v271_v3 = vld [vmem:[#allocation4 + $0x8] sm:$0xff]  ;;  %v354_v5 = vld [vmem:[#allocation6] sm:$0xff] }
  0x66   : > { %752 = vsyncadd (%p1001_p6), [#allocation5], 4294966528  ;;  %569 = vmatprep.subr.bf16.mxu0 %v774_v0  ;;  %555 = vmatprep.mubr.msk.f32.mxu0 %vm775_vm0, %v776_v1  ;;  %v570_v4 = vpack.c.bf16 %v271_v3, %v270_v2  ;;  %v355_v6 = vld [vmem:[#allocation6 + $0x8] sm:$0xff]  ;;  %vm279_vm1 = vcmask 130048   ;;  %v356_v9 = vld [vmem:[#allocation6 + $0x10] sm:$0xff]  ;;  %vm365_vm2 = vcmask 261120  }
  0x67   : > { %572 = vmatprep.subr.bf16.mxu1 %v774_v0  ;;  %566 = vmatprep.mubr.msk.f32.mxu1 %vm775_vm0, %v776_v1  ;;  %v573_v7 = vpack.c.bf16 %v355_v6, %v354_v5  ;;  %v269_v8 = vld [vmem:[%s231_s29] sm:$0xff]  ;;  %v357_v10 = vld [vmem:[#allocation6 + $0x18] sm:$0xff]  ;;  %p265_p7 = scmp.lt.s32.totalorder %s826_s22, 1  ;;  %vm439_vm3 = vcmask 48128  }
  0x68   : > { %571 = vmatpush3.bf16.msra.mxu0 %v570_v4  ;;  %v576_v11 = vpack.c.bf16 %v357_v10, %v356_v9  ;;  %v537_v12 = vld [vmem:[%s987_s2] ss:$0 sm:$0xff] }
  0x69   : > { %574 = vmatpush3.bf16.msra.mxu1 %v573_v7  ;;  %s1007_s22 = smov (!%p265_p7, %s826_s22), 1  ;;  %v539_v17 = vld [vmem:[%s989_s4] ss:$0 sm:$0xff] }
  0x6a   : > { %575 = vmatprep.subr.bf16.mxu1 %v774_v0  ;;  %s536_s28 = sshll.u32 %s1007_s22, 3 }
  0x6b   : > { %556 = vmatmul.mubr.msk.f32.vlgmr.msra.gmra.mrb[0].mxu0 %vm279_vm1, %v269_v8  ;;  %s268_s6 = scalar_lea.vmem %s990_s5, %s536_s28 }
  0x6d   : > { %577 = vmatpush3.bf16.msra.mxu1 %v576_v11 }
 0x13e   : > { %v349_v13 = vpop.f32.mrb[0].mxu0 }
 0x13f   : > { %v350_v14 = vadd.f32 %v537_v12, %v349_v13  ;;  %v557_v15 = vpop.f32.mrb[1].mxu0 }
 0x141   : > { %v353_v16 = vmax.f32 %v350_v14, 0.0 }
 0x143   : > { %567 = vmatmul.mubr.msk.f32.vlgmr.msra.gmra.mrb[0].mxu1 %vm365_vm2, %v353_v16 }
 0x216   : > { %v435_v18 = vpop.f32.mrb[0].mxu1 }
 0x217   : > { %v436_v19 = vadd.f32 %v539_v17, %v435_v18  ;;  %v568_v20 = vpop.f32.mrb[1].mxu1 }
 0x219   : > { %440 = vst.msk [vmem:[%s268_s6] sm:$0xff] %vm439_vm3, %v436_v19 }
 0x21a PF: > { %p16_p9 = scmp.ge.s32.totalorder %s900_s10, 4   ;;  %s1002_s18 = smov %s759_s19 }
 0x21b   : > { %s1003_s19 = smov %s763_s20  ;;  %s1004_s20 = smov %s911_s15 }
 0x21c   : > { %s1005_s21 = smov %s900_s10  ;;  %18 = sbr.rel (!%p16_p9) target bundleno = 4 (0x4), region = 88 }
 0x223   :  { %460 = vsyncpa [#allocation3], 1 }
 0x224   :  { %462 = vsyncpa [#allocation3 + $0x1], 1 }
 0x225   :  { %463 = vsyncpa [#allocation5], 1 }

</bundles_post_ra>
